<compile_context>
chip_gen: v5e
topology: v5e:2x2
jax: 0.10.0
libtpu: 0.0.40
codegen_flags: <defaults>
</compile_context>

<pallas_src>
import functools

import jax
import jax.numpy as jnp
from jax import lax
from jax.experimental import pallas as pl
from jax.experimental.pallas import tpu as pltpu


def _round_up(v, m):
    return (v + m - 1) // m * m


def _vmem_limit(block_bytes, *, floor=16 * 1024 * 1024, cap=64 * 1024 * 1024):
    """Scoped-VMEM limit sized from the (double-buffered) blocks plus temporaries headroom."""
    need = 2 * int(block_bytes) + (4 << 20)
    return int(min(max(need, floor), cap))


def _im2col(win, *, out_w, k_size, c_in, kc_pad):
    """(kc_pad, out_w) im2col matrix from a (c_in, W) window, W a multiple of 128, W >= out_w+k-1.

    Row order is k-major (row = k*c_in + ci) to match the flattened weight layout.  The K lane
    shifts are circular rolls (XLU slot) followed by a lane-aligned [:, :out_w] slice — no
    unaligned VMEM slice copies.  Rows are zero-padded up to kc_pad (multiple of 8 sublanes).
    """
    win_w = win.shape[-1]
    rows = []
    for k in range(k_size):
        shifted = win if k == 0 else pltpu.roll(win, shift=win_w - k, axis=1)
        rows.append(shifted[:, :out_w])
    pad_rows = kc_pad - k_size * c_in
    if pad_rows:
        rows.append(jnp.zeros((pad_rows, out_w), dtype=win.dtype))
    return jnp.concatenate(rows, axis=0)


def _conv_val_gate(win, wv, wg, bv, bg, *, out_w, k_size, c_in, kc_pad):
    """Conv1d for one window, split into GLU value / gate halves (two small MXU matmuls)."""
    patches = _im2col(win, out_w=out_w, k_size=k_size, c_in=c_in, kc_pad=kc_pad)
    val = jnp.dot(wv, patches, preferred_element_type=jnp.float32) + bv
    gate = jnp.dot(wg, patches, preferred_element_type=jnp.float32) + bg
    return val, gate


# --------------------------------------------------------------------------------------------
# Pass 1 (general path): conv -> write pre-BN y (value & gate) -> accumulate BN stats.
# --------------------------------------------------------------------------------------------
def _conv_stats_kernel(x_ref, wv_ref, wg_ref, bv_ref, bg_ref,
                       yv_ref, yg_ref, stats_ref,
                       *, tile_l, win_w, k_size, c_in, kc_pad, l_valid):
    t = pl.program_id(1)

    @pl.when(t == 0)
    def _():
        stats_ref[...] = jnp.zeros_like(stats_ref)

    start = pl.multiple_of(t * tile_l, tile_l)
    win = x_ref[:, pl.ds(start, win_w)]                    # (c_in, win_w), 128-aligned width
    val, gate = _conv_val_gate(win, wv_ref[...], wg_ref[...], bv_ref[...], bg_ref[...],
                               out_w=tile_l, k_size=k_size, c_in=c_in, kc_pad=kc_pad)
    yv_ref[...] = val
    yg_ref[...] = gate

    # Exclude padded tail columns (global position >= real output length) from the statistics.
    col = t * tile_l + lax.broadcasted_iota(jnp.int32, (1, tile_l), 1)
    keep = col < l_valid
    vm = jnp.where(keep, val, 0.0)
    gm = jnp.where(keep, gate, 0.0)
    part_v = jnp.concatenate([jnp.sum(vm, axis=-1, keepdims=True),
                              jnp.sum(vm * vm, axis=-1, keepdims=True)], axis=1)   # (half, 2)
    part_g = jnp.concatenate([jnp.sum(gm, axis=-1, keepdims=True),
                              jnp.sum(gm * gm, axis=-1, keepdims=True)], axis=1)   # (half, 2)
    stats_ref[...] += jnp.concatenate([part_v, part_g], axis=0)                    # (c_out, 2)


# --------------------------------------------------------------------------------------------
# Pass 2 (general path): pure elementwise folded-BN + GLU over the stored activations.
# --------------------------------------------------------------------------------------------
def _bn_glu_kernel(yv_ref, yg_ref, sv_ref, tv_ref, sg_ref, tg_ref, o_ref):
    val = yv_ref[...] * sv_ref[...] + tv_ref[...]
    gate = yg_ref[...] * sg_ref[...] + tg_ref[...]
    o_ref[...] = (val * jax.nn.sigmoid(gate)).astype(o_ref.dtype)


# --------------------------------------------------------------------------------------------
# Fused fast path: whole layer in one pallas_call (y held in VMEM scratch).
# --------------------------------------------------------------------------------------------
def _fused_kernel(x_ref, wv_ref, wg_ref, bv_ref, bg_ref, gv_ref, bev_ref, gg_ref, beg_ref,
                  o_ref, yv_scr, yg_scr,
                  *, n, l_out, k_size, c_in, kc_pad, half, eps):
    wv = wv_ref[...]
    wg = wg_ref[...]
    bv = bv_ref[...]
    bg = bg_ref[...]

    def conv_body(i, carry):
        sv, ssv, sg, ssg = carry
        val, gate = _conv_val_gate(x_ref[i], wv, wg, bv, bg,
                                   out_w=l_out, k_size=k_size, c_in=c_in, kc_pad=kc_pad)
        yv_scr[i] = val
        yg_scr[i] = gate
        return (sv + jnp.sum(val, axis=-1, keepdims=True),
                ssv + jnp.sum(val * val, axis=-1, keepdims=True),
                sg + jnp.sum(gate, axis=-1, keepdims=True),
                ssg + jnp.sum(gate * gate, axis=-1, keepdims=True))

    zero = jnp.zeros((half, 1), jnp.float32)
    sv, ssv, sg, ssg = lax.fori_loop(0, n, conv_body, (zero, zero, zero, zero))

    inv_count = 1.0 / float(n * l_out)
    mv = sv * inv_count
    vv = jnp.maximum(ssv * inv_count - mv * mv, 0.0)        # biased (train-mode) variance
    mg = sg * inv_count
    vg = jnp.maximum(ssg * inv_count - mg * mg, 0.0)
    scale_v = gv_ref[...] * lax.rsqrt(vv + eps)
    shift_v = bev_ref[...] - mv * scale_v
    scale_g = gg_ref[...] * lax.rsqrt(vg + eps)
    shift_g = beg_ref[...] - mg * scale_g

    def apply_body(i, carry):
        val = yv_scr[i] * scale_v + shift_v
        gate = yg_scr[i] * scale_g + shift_g
        o_ref[i] = (val * jax.nn.sigmoid(gate)).astype(o_ref.dtype)
        return carry

    lax.fori_loop(0, n, apply_body, 0)


# --------------------------------------------------------------------------------------------
# Wrapper
# --------------------------------------------------------------------------------------------
def downsampling_layer(x_ncl, weight, bias, gamma, beta, *, padding=7, eps=1e-5,
                       max_tile_l=None, fast_path_bytes=4 * 1024 * 1024):
    """x_ncl: (N, C_in, L); weight: (C_out, C_in, K). Returns (N, C_out // 2, L_out)."""
    n, c_in, l = x_ncl.shape
    c_out, _, k_size = weight.shape
    assert c_out % 2 == 0, "GLU(dim=1) needs an even channel count"
    half = c_out // 2
    l_out = l + 2 * padding - (k_size - 1)                  # stride=1, dilation=1
    kc = k_size * c_in
    kc_pad = _round_up(kc, 8)                               # 8-sublane-aligned im2col rows
    fdtype = jnp.float32
    itemsize = x_ncl.dtype.itemsize

    # Flatten + pad weights; split into GLU value/gate halves in the wrapper so the kernels never
    # slice 4 sublanes out of an 8-row vreg group.
    w_flat = jnp.transpose(weight, (0, 2, 1)).reshape(c_out, kc)
    if kc_pad != kc:
        w_flat = jnp.pad(w_flat, ((0, 0), (0, kc_pad - kc)))
    w_val, w_gate = w_flat[:half], w_flat[half:]
    b_val = bias[:half].reshape(half, 1).astype(fdtype)
    b_gate = bias[half:].reshape(half, 1).astype(fdtype)

    # TODO(synk): running_mean / running_var buffer updates (PyTorch training-mode side effect)
    # are not produced; eval-mode would pass running stats instead of batch stats.

    # ---------------- small-problem fused fast path ----------------
    fused_l_pad = _round_up(l_out + k_size - 1, 128)        # lane-aligned roll window
    fused_bytes = 4 * (n * c_in * fused_l_pad + 2 * n * c_out * l_out + n * half * l_out)
    if fused_bytes <= fast_path_bytes:
        x_pad = jnp.pad(x_ncl, ((0, 0), (0, 0), (padding, fused_l_pad - padding - l)))
        g_val = gamma[:half].reshape(half, 1).astype(fdtype)
        g_gate = gamma[half:].reshape(half, 1).astype(fdtype)
        be_val = beta[:half].reshape(half, 1).astype(fdtype)
        be_gate = beta[half:].reshape(half, 1).astype(fdtype)
        return pl.pallas_call(
            functools.partial(_fused_kernel, n=n, l_out=l_out, k_size=k_size, c_in=c_in,
                              kc_pad=kc_pad, half=half, eps=eps),
            out_shape=jax.ShapeDtypeStruct((n, half, l_out), x_ncl.dtype),
            grid=(1,),
            in_specs=[
                pl.BlockSpec((n, c_in, fused_l_pad), lambda i: (0, 0, 0)),
                pl.BlockSpec((half, kc_pad), lambda i: (0, 0)),
                pl.BlockSpec((half, kc_pad), lambda i: (0, 0)),
                pl.BlockSpec((half, 1), lambda i: (0, 0)),
                pl.BlockSpec((half, 1), lambda i: (0, 0)),
                pl.BlockSpec((half, 1), lambda i: (0, 0)),
                pl.BlockSpec((half, 1), lambda i: (0, 0)),
                pl.BlockSpec((half, 1), lambda i: (0, 0)),
                pl.BlockSpec((half, 1), lambda i: (0, 0)),
            ],
            out_specs=pl.BlockSpec((n, half, l_out), lambda i: (0, 0, 0)),
            scratch_shapes=[pltpu.VMEM((n, half, l_out), fdtype),
                            pltpu.VMEM((n, half, l_out), fdtype)],
            compiler_params=pltpu.CompilerParams(
                dimension_semantics=("arbitrary",),
                vmem_limit_bytes=_vmem_limit(fused_bytes),
            ),
            cost_estimate=pl.CostEstimate(
                flops=2 * n * l_out * c_out * kc_pad + 10 * n * l_out * c_out,
                transcendentals=n * l_out * half,
                bytes_accessed=int(x_pad.size * itemsize + n * half * l_out * itemsize),
            ),
        )(x_pad, w_val, w_gate, b_val, b_gate, g_val, be_val, g_gate, be_gate)

    # ---------------- general two-pass path ----------------
    if max_tile_l is None:
        # Largest 128-multiple lane tile such that double-buffered im2col + activation blocks stay
        # within a few MiB of VMEM (scales down automatically as c_in grows).
        budget = 6 * 1024 * 1024
        per_lane = 4 * (2 * kc_pad + 4 * c_out)
        max_tile_l = max(128, min(4096, (budget // per_lane) // 128 * 128))
    if l_out <= max_tile_l:
        tile_l, n_lt = l_out, 1
    else:
        tile_l = max(128, max_tile_l - max_tile_l % 128)
        n_lt = pl.cdiv(l_out, tile_l)
    l_out_tiles = n_lt * tile_l
    win_w = _round_up(tile_l + k_size - 1, 128)             # lane-aligned roll window per tile

    # TODO(synk): conv zero-padding is one wrapper-side jnp.pad (extra HBM pass over x at very
    # large L) and x is kept as a full-L per-batch-element VMEM slab; in-kernel boundary masking
    # with overlapping halo BlockSpecs (pl.Element) would remove both and bound VMEM to O(tile_l).
    l_pad = l_out_tiles - tile_l + win_w
    x_pad = jnp.pad(x_ncl, ((0, 0), (0, 0), (padding, l_pad - padding - l)))

    p1_block_bytes = 4 * (c_in * l_pad + 2 * half * kc_pad + 4 * half
                          + 2 * half * tile_l + c_out * 2 + 3 * kc_pad * win_w)
    yv, yg, stats = pl.pallas_call(
        functools.partial(_conv_stats_kernel, tile_l=tile_l, win_w=win_w, k_size=k_size,
                          c_in=c_in, kc_pad=kc_pad, l_valid=l_out),
        out_shape=(jax.ShapeDtypeStruct((n, half, l_out_tiles), fdtype),
                   jax.ShapeDtypeStruct((n, half, l_out_tiles), fdtype),
                   jax.ShapeDtypeStruct((n, c_out, 2), fdtype)),
        grid=(n, n_lt),
        in_specs=[
            pl.BlockSpec((None, c_in, l_pad), lambda i, j: (i, 0, 0)),   # x: full L per batch elem
            pl.BlockSpec((half, kc_pad), lambda i, j: (0, 0)),           # value weights
            pl.BlockSpec((half, kc_pad), lambda i, j: (0, 0)),           # gate weights
            pl.BlockSpec((half, 1), lambda i, j: (0, 0)),                # value bias
            pl.BlockSpec((half, 1), lambda i, j: (0, 0)),                # gate bias
        ],
        out_specs=[
            pl.BlockSpec((None, half, tile_l), lambda i, j: (i, 0, j)),  # pre-BN value
            pl.BlockSpec((None, half, tile_l), lambda i, j: (i, 0, j)),  # pre-BN gate
            pl.BlockSpec((None, c_out, 2), lambda i, j: (i, 0, 0)),      # stats accumulator
        ],
        compiler_params=pltpu.CompilerParams(
            dimension_semantics=("parallel", "arbitrary"),
            vmem_limit_bytes=_vmem_limit(p1_block_bytes),
        ),
        cost_estimate=pl.CostEstimate(
            flops=2 * n * l_out_tiles * c_out * kc_pad + 8 * n * l_out_tiles * c_out,
            transcendentals=0,
            bytes_accessed=int(x_pad.size * itemsize + 2 * n * half * l_out_tiles * 4),
        ),
    )(x_pad, w_val, w_gate, b_val, b_gate)

    # Tiny wrapper-side reduction over N only; fold BN into per-channel scale/shift.
    totals = jnp.sum(stats, axis=0)                         # (c_out, 2): [sum, sum of squares]
    count = n * l_out
    mean = totals[:, 0] / count
    var = jnp.maximum(totals[:, 1] / count - mean * mean, 0.0)   # biased (train-mode) variance
    scale = gamma.astype(fdtype) * lax.rsqrt(var + eps)
    shift = beta.astype(fdtype) - mean * scale
    scale_v = scale[:half].reshape(half, 1)
    shift_v = shift[:half].reshape(half, 1)
    scale_g = scale[half:].reshape(half, 1)
    shift_g = shift[half:].reshape(half, 1)

    p2_block_bytes = 4 * (2 * half * tile_l + 4 * half) + half * tile_l * itemsize
    out_full = pl.pallas_call(
        _bn_glu_kernel,
        out_shape=jax.ShapeDtypeStruct((n, half, l_out_tiles), x_ncl.dtype),
        grid=(n, n_lt),
        in_specs=[
            pl.BlockSpec((None, half, tile_l), lambda i, j: (i, 0, j)),
            pl.BlockSpec((None, half, tile_l), lambda i, j: (i, 0, j)),
            pl.BlockSpec((half, 1), lambda i, j: (0, 0)),
            pl.BlockSpec((half, 1), lambda i, j: (0, 0)),
            pl.BlockSpec((half, 1), lambda i, j: (0, 0)),
            pl.BlockSpec((half, 1), lambda i, j: (0, 0)),
        ],
        out_specs=pl.BlockSpec((None, half, tile_l), lambda i, j: (i, 0, j)),
        compiler_params=pltpu.CompilerParams(
            dimension_semantics=("parallel", "parallel"),
            vmem_limit_bytes=_vmem_limit(p2_block_bytes),
        ),
        cost_estimate=pl.CostEstimate(
            flops=5 * n * half * l_out_tiles,
            transcendentals=n * half * l_out_tiles,
            bytes_accessed=int(2 * n * half * l_out_tiles * 4 + n * half * l_out_tiles * itemsize),
        ),
    )(yv, yg, scale_v, shift_v, scale_g, shift_g)

    return out_full if l_out_tiles == l_out else out_full[..., :l_out]


def _reference(x_ncl, weight, bias, gamma, beta, padding=7, eps=1e-5):
    """Pure-JAX reference mirroring the PyTorch module (train-mode BN)."""
    y = lax.conv_general_dilated(
        x_ncl, weight, window_strides=(1,), padding=[(padding, padding)],
        dimension_numbers=("NCH", "OIH", "NCH"),
    )
    y = y + bias[None, :, None]
    mean = jnp.mean(y, axis=(0, 2), keepdims=True)
    var = jnp.mean((y - mean) ** 2, axis=(0, 2), keepdims=True)
    y = (y - mean) / jnp.sqrt(var + eps)
    y = y * gamma[None, :, None] + beta[None, :, None]
    half = y.shape[1] // 2
    return y[:, :half] * jax.nn.sigmoid(y[:, half:])


if __name__ == "__main__":
    key = jax.random.PRNGKey(0)
    kx, kw, kb, kg, kbe, kx2 = jax.random.split(key, 6)

    # DownSamplingLayer defaults: Conv1d(kernel_size=15, stride=1, padding=7) -> BN -> GLU(dim=1).
    n, c_in, c_out, l, k_size, padding = 2, 4, 8, 16, 15, 7
    x = jax.random.normal(kx, (n, c_in, l), dtype=jnp.float32)
    weight = jax.random.normal(kw, (c_out, c_in, k_size), dtype=jnp.float32) * 0.1
    bias = jax.random.normal(kb, (c_out,), dtype=jnp.float32) * 0.1
    gamma = 1.0 + 0.1 * jax.random.normal(kg, (c_out,), dtype=jnp.float32)
    beta = 0.1 * jax.random.normal(kbe, (c_out,), dtype=jnp.float32)

    # 1) Fused single-call fast path (default at this size).
    out = jax.block_until_ready(downsampling_layer(x, weight, bias, gamma, beta, padding=padding))
    ref = jax.block_until_ready(_reference(x, weight, bias, gamma, beta, padding=padding))
    assert out.shape == (n, c_out // 2, l), out.shape
    assert jnp.allclose(out, ref, atol=2e-3, rtol=2e-3), float(jnp.max(jnp.abs(out - ref)))

    # 2) General two-pass path, multi-tile (L not a multiple of the 128-wide lane tile).
    l2 = 300
    x2 = jax.random.normal(kx2, (n, c_in, l2), dtype=jnp.float32)
    ref2 = jax.block_until_ready(_reference(x2, weight, bias, gamma, beta, padding=padding))
    out2 = jax.block_until_ready(
        downsampling_layer(x2, weight, bias, gamma, beta, padding=padding,
                           max_tile_l=128, fast_path_bytes=0))
    assert out2.shape == (n, c_out // 2, l2), out2.shape
    assert jnp.allclose(out2, ref2, atol=2e-3, rtol=2e-3), float(jnp.max(jnp.abs(out2 - ref2)))

    # 3) General two-pass path, single tile (auto tile size, fused path disabled).
    out3 = jax.block_until_ready(
        downsampling_layer(x2, weight, bias, gamma, beta, padding=padding, fast_path_bytes=0))
    assert jnp.allclose(out3, ref2, atol=2e-3, rtol=2e-3), float(jnp.max(jnp.abs(out3 - ref2)))

    print("KERNEL_OK")
</pallas_src>

<mosaic_0001>
module attributes {stable_mosaic.version = 11 : i64} {
  func.func @_fused_kernel(%arg0: i32, %arg1: memref<2x4x128xf32, #tpu.memory_space<vmem>>, %arg2: memref<4x64xf32, #tpu.memory_space<vmem>>, %arg3: memref<4x64xf32, #tpu.memory_space<vmem>>, %arg4: memref<4x1xf32, #tpu.memory_space<vmem>>, %arg5: memref<4x1xf32, #tpu.memory_space<vmem>>, %arg6: memref<4x1xf32, #tpu.memory_space<vmem>>, %arg7: memref<4x1xf32, #tpu.memory_space<vmem>>, %arg8: memref<4x1xf32, #tpu.memory_space<vmem>>, %arg9: memref<4x1xf32, #tpu.memory_space<vmem>>, %arg10: memref<2x4x16xf32, #tpu.memory_space<vmem>>, %arg11: memref<2x4x16xf32, #tpu.memory_space<vmem>>, %arg12: memref<2x4x16xf32, #tpu.memory_space<vmem>>) attributes {dimension_semantics = [#tpu.dimension_semantics<arbitrary>], iteration_bounds = array<i64: 1>, scalar_prefetch = 0 : i64, scratch_operands = 2 : i64, tpu.core_type = #tpu.core_type<tc>, window_params = [{pipeline_mode = #tpu.pipeline_mode<synchronous>, transform_indices = @transform_0, window_bounds = array<i64: 2, 4, 128>}, {pipeline_mode = #tpu.pipeline_mode<synchronous>, transform_indices = @transform_1, window_bounds = array<i64: 4, 64>}, {pipeline_mode = #tpu.pipeline_mode<synchronous>, transform_indices = @transform_2, window_bounds = array<i64: 4, 64>}, {pipeline_mode = #tpu.pipeline_mode<synchronous>, transform_indices = @transform_3, window_bounds = array<i64: 4, 1>}, {pipeline_mode = #tpu.pipeline_mode<synchronous>, transform_indices = @transform_4, window_bounds = array<i64: 4, 1>}, {pipeline_mode = #tpu.pipeline_mode<synchronous>, transform_indices = @transform_5, window_bounds = array<i64: 4, 1>}, {pipeline_mode = #tpu.pipeline_mode<synchronous>, transform_indices = @transform_6, window_bounds = array<i64: 4, 1>}, {pipeline_mode = #tpu.pipeline_mode<synchronous>, transform_indices = @transform_7, window_bounds = array<i64: 4, 1>}, {pipeline_mode = #tpu.pipeline_mode<synchronous>, transform_indices = @transform_8, window_bounds = array<i64: 4, 1>}, {pipeline_mode = #tpu.pipeline_mode<synchronous>, transform_indices = @transform_9, window_bounds = array<i64: 2, 4, 16>}]} {
    %c0 = arith.constant 0 : index
    %c0_0 = arith.constant 0 : index
    %0 = vector.load %arg2[%c0, %c0_0] : memref<4x64xf32, #tpu.memory_space<vmem>>, vector<4x64xf32>
    %c0_1 = arith.constant 0 : index
    %c0_2 = arith.constant 0 : index
    %1 = vector.load %arg3[%c0_1, %c0_2] : memref<4x64xf32, #tpu.memory_space<vmem>>, vector<4x64xf32>
    %c0_3 = arith.constant 0 : index
    %c0_4 = arith.constant 0 : index
    %2 = vector.load %arg4[%c0_3, %c0_4] : memref<4x1xf32, #tpu.memory_space<vmem>>, vector<4x1xf32>
    %c0_5 = arith.constant 0 : index
    %c0_6 = arith.constant 0 : index
    %3 = vector.load %arg5[%c0_5, %c0_6] : memref<4x1xf32, #tpu.memory_space<vmem>>, vector<4x1xf32>
    %cst = arith.constant 0.000000e+00 : f32
    %4 = vector.broadcast %cst : f32 to vector<4x1xf32>
    %c0_i32 = arith.constant 0 : i32
    %c2_i32 = arith.constant 2 : i32
    %5 = arith.addi %c0_i32, %c2_i32 : i32
    %c1_i32 = arith.constant 1 : i32
    %6:4 = scf.for %arg13 = %c0_i32 to %5 step %c1_i32 iter_args(%arg14 = %4, %arg15 = %4, %arg16 = %4, %arg17 = %4) -> (vector<4x1xf32>, vector<4x1xf32>, vector<4x1xf32>, vector<4x1xf32>)  : i32 {
      %40 = arith.index_cast %arg13 : i32 to index
      %c0_28 = arith.constant 0 : index
      %c0_29 = arith.constant 0 : index
      %41 = vector.load %arg1[%40, %c0_28, %c0_29] : memref<2x4x128xf32, #tpu.memory_space<vmem>>, vector<1x4x128xf32>
      %42 = vector.shape_cast %41 : vector<1x4x128xf32> to vector<4x128xf32>
      %43 = vector.extract_strided_slice %42 {offsets = [0, 0], sizes = [4, 16], strides = [1, 1]} : vector<4x128xf32> to vector<4x16xf32>
      %c127_i32 = arith.constant 127 : i32
      %44 = tpu.dynamic_rotate %42 by %c127_i32 dim 1 : vector<4x128xf32>, i32 -> vector<4x128xf32>
      %45 = vector.extract_strided_slice %44 {offsets = [0, 0], sizes = [4, 16], strides = [1, 1]} : vector<4x128xf32> to vector<4x16xf32>
      %c126_i32 = arith.constant 126 : i32
      %46 = tpu.dynamic_rotate %42 by %c126_i32 dim 1 : vector<4x128xf32>, i32 -> vector<4x128xf32>
      %47 = vector.extract_strided_slice %46 {offsets = [0, 0], sizes = [4, 16], strides = [1, 1]} : vector<4x128xf32> to vector<4x16xf32>
      %c125_i32 = arith.constant 125 : i32
      %48 = tpu.dynamic_rotate %42 by %c125_i32 dim 1 : vector<4x128xf32>, i32 -> vector<4x128xf32>
      %49 = vector.extract_strided_slice %48 {offsets = [0, 0], sizes = [4, 16], strides = [1, 1]} : vector<4x128xf32> to vector<4x16xf32>
      %c124_i32 = arith.constant 124 : i32
      %50 = tpu.dynamic_rotate %42 by %c124_i32 dim 1 : vector<4x128xf32>, i32 -> vector<4x128xf32>
      %51 = vector.extract_strided_slice %50 {offsets = [0, 0], sizes = [4, 16], strides = [1, 1]} : vector<4x128xf32> to vector<4x16xf32>
      %c123_i32 = arith.constant 123 : i32
      %52 = tpu.dynamic_rotate %42 by %c123_i32 dim 1 : vector<4x128xf32>, i32 -> vector<4x128xf32>
      %53 = vector.extract_strided_slice %52 {offsets = [0, 0], sizes = [4, 16], strides = [1, 1]} : vector<4x128xf32> to vector<4x16xf32>
      %c122_i32 = arith.constant 122 : i32
      %54 = tpu.dynamic_rotate %42 by %c122_i32 dim 1 : vector<4x128xf32>, i32 -> vector<4x128xf32>
      %55 = vector.extract_strided_slice %54 {offsets = [0, 0], sizes = [4, 16], strides = [1, 1]} : vector<4x128xf32> to vector<4x16xf32>
      %c121_i32 = arith.constant 121 : i32
      %56 = tpu.dynamic_rotate %42 by %c121_i32 dim 1 : vector<4x128xf32>, i32 -> vector<4x128xf32>
      %57 = vector.extract_strided_slice %56 {offsets = [0, 0], sizes = [4, 16], strides = [1, 1]} : vector<4x128xf32> to vector<4x16xf32>
      %c120_i32 = arith.constant 120 : i32
      %58 = tpu.dynamic_rotate %42 by %c120_i32 dim 1 : vector<4x128xf32>, i32 -> vector<4x128xf32>
      %59 = vector.extract_strided_slice %58 {offsets = [0, 0], sizes = [4, 16], strides = [1, 1]} : vector<4x128xf32> to vector<4x16xf32>
      %c119_i32 = arith.constant 119 : i32
      %60 = tpu.dynamic_rotate %42 by %c119_i32 dim 1 : vector<4x128xf32>, i32 -> vector<4x128xf32>
      %61 = vector.extract_strided_slice %60 {offsets = [0, 0], sizes = [4, 16], strides = [1, 1]} : vector<4x128xf32> to vector<4x16xf32>
      %c118_i32 = arith.constant 118 : i32
      %62 = tpu.dynamic_rotate %42 by %c118_i32 dim 1 : vector<4x128xf32>, i32 -> vector<4x128xf32>
      %63 = vector.extract_strided_slice %62 {offsets = [0, 0], sizes = [4, 16], strides = [1, 1]} : vector<4x128xf32> to vector<4x16xf32>
      %c117_i32 = arith.constant 117 : i32
      %64 = tpu.dynamic_rotate %42 by %c117_i32 dim 1 : vector<4x128xf32>, i32 -> vector<4x128xf32>
      %65 = vector.extract_strided_slice %64 {offsets = [0, 0], sizes = [4, 16], strides = [1, 1]} : vector<4x128xf32> to vector<4x16xf32>
      %c116_i32 = arith.constant 116 : i32
      %66 = tpu.dynamic_rotate %42 by %c116_i32 dim 1 : vector<4x128xf32>, i32 -> vector<4x128xf32>
      %67 = vector.extract_strided_slice %66 {offsets = [0, 0], sizes = [4, 16], strides = [1, 1]} : vector<4x128xf32> to vector<4x16xf32>
      %c115_i32 = arith.constant 115 : i32
      %68 = tpu.dynamic_rotate %42 by %c115_i32 dim 1 : vector<4x128xf32>, i32 -> vector<4x128xf32>
      %69 = vector.extract_strided_slice %68 {offsets = [0, 0], sizes = [4, 16], strides = [1, 1]} : vector<4x128xf32> to vector<4x16xf32>
      %c114_i32 = arith.constant 114 : i32
      %70 = tpu.dynamic_rotate %42 by %c114_i32 dim 1 : vector<4x128xf32>, i32 -> vector<4x128xf32>
      %71 = vector.extract_strided_slice %70 {offsets = [0, 0], sizes = [4, 16], strides = [1, 1]} : vector<4x128xf32> to vector<4x16xf32>
      %cst_30 = arith.constant 0.000000e+00 : f32
      %72 = vector.broadcast %cst_30 : f32 to vector<4x16xf32>
      %73 = tpu.concatenate %43, %45, %47, %49, %51, %53, %55, %57, %59, %61, %63, %65, %67, %69, %71, %72 in 0 : vector<4x16xf32>, vector<4x16xf32>, vector<4x16xf32>, vector<4x16xf32>, vector<4x16xf32>, vector<4x16xf32>, vector<4x16xf32>, vector<4x16xf32>, vector<4x16xf32>, vector<4x16xf32>, vector<4x16xf32>, vector<4x16xf32>, vector<4x16xf32>, vector<4x16xf32>, vector<4x16xf32>, vector<4x16xf32> -> vector<64x16xf32>
      %cst_31 = arith.constant dense<0.000000e+00> : vector<4x16xf32>
      %74 = tpu.matmul %0, %73, %cst_31 {dimension_numbers = #tpu.dot_dimension_numbers<[1], [0], [0], [1], [0, 0, 1, 1], [], []>} : vector<4x64xf32>, vector<64x16xf32>, vector<4x16xf32> -> vector<4x16xf32>
      %75 = vector.broadcast %2 : vector<4x1xf32> to vector<4x16xf32>
      %76 = arith.addf %74, %75 : vector<4x16xf32>
      %cst_32 = arith.constant dense<0.000000e+00> : vector<4x16xf32>
      %77 = tpu.matmul %1, %73, %cst_32 {dimension_numbers = #tpu.dot_dimension_numbers<[1], [0], [0], [1], [0, 0, 1, 1], [], []>} : vector<4x64xf32>, vector<64x16xf32>, vector<4x16xf32> -> vector<4x16xf32>
      %78 = vector.broadcast %3 : vector<4x1xf32> to vector<4x16xf32>
      %79 = arith.addf %77, %78 : vector<4x16xf32>
      %80 = arith.index_cast %arg13 : i32 to index
      %c0_33 = arith.constant 0 : index
      %c0_34 = arith.constant 0 : index
      %81 = vector.load %arg11[%80, %c0_33, %c0_34] : memref<2x4x16xf32, #tpu.memory_space<vmem>>, vector<1x4x16xf32>
      %82 = vector.shape_cast %81 : vector<1x4x16xf32> to vector<4x16xf32>
      %83 = vector.shape_cast %76 : vector<4x16xf32> to vector<1x4x16xf32>
      tpu.vector_store %arg11[%80, %c0_33, %c0_34], %83 {strides = array<i32>} : memref<2x4x16xf32, #tpu.memory_space<vmem>>, vector<1x4x16xf32>,
      %84 = arith.index_cast %arg13 : i32 to index
      %c0_35 = arith.constant 0 : index
      %c0_36 = arith.constant 0 : index
      %85 = vector.load %arg12[%84, %c0_35, %c0_36] : memref<2x4x16xf32, #tpu.memory_space<vmem>>, vector<1x4x16xf32>
      %86 = vector.shape_cast %85 : vector<1x4x16xf32> to vector<4x16xf32>
      %87 = vector.shape_cast %79 : vector<4x16xf32> to vector<1x4x16xf32>
      tpu.vector_store %arg12[%84, %c0_35, %c0_36], %87 {strides = array<i32>} : memref<2x4x16xf32, #tpu.memory_space<vmem>>, vector<1x4x16xf32>,
      %cst_37 = arith.constant dense<0.000000e+00> : vector<4xf32>
      %88 = vector.multi_reduction <add>, %76, %cst_37 [1] : vector<4x16xf32> to vector<4xf32>
      %89 = vector.shape_cast %88 : vector<4xf32> to vector<4x1xf32>
      %90 = arith.addf %arg14, %89 : vector<4x1xf32>
      %91 = arith.mulf %76, %76 : vector<4x16xf32>
      %cst_38 = arith.constant dense<0.000000e+00> : vector<4xf32>
      %92 = vector.multi_reduction <add>, %91, %cst_38 [1] : vector<4x16xf32> to vector<4xf32>
      %93 = vector.shape_cast %92 : vector<4xf32> to vector<4x1xf32>
      %94 = arith.addf %arg15, %93 : vector<4x1xf32>
      %cst_39 = arith.constant dense<0.000000e+00> : vector<4xf32>
      %95 = vector.multi_reduction <add>, %79, %cst_39 [1] : vector<4x16xf32> to vector<4xf32>
      %96 = vector.shape_cast %95 : vector<4xf32> to vector<4x1xf32>
      %97 = arith.addf %arg16, %96 : vector<4x1xf32>
      %98 = arith.mulf %79, %79 : vector<4x16xf32>
      %cst_40 = arith.constant dense<0.000000e+00> : vector<4xf32>
      %99 = vector.multi_reduction <add>, %98, %cst_40 [1] : vector<4x16xf32> to vector<4xf32>
      %100 = vector.shape_cast %99 : vector<4xf32> to vector<4x1xf32>
      %101 = arith.addf %arg17, %100 : vector<4x1xf32>
      scf.yield %90, %94, %97, %101 : vector<4x1xf32>, vector<4x1xf32>, vector<4x1xf32>, vector<4x1xf32>
    }
    %c2_i32_7 = arith.constant 2 : i32
    %cst_8 = arith.constant 3.125000e-02 : f32
    %7 = vector.broadcast %cst_8 : f32 to vector<4x1xf32>
    %8 = arith.mulf %6#0, %7 : vector<4x1xf32>
    %cst_9 = arith.constant 3.125000e-02 : f32
    %9 = vector.broadcast %cst_9 : f32 to vector<4x1xf32>
    %10 = arith.mulf %6#1, %9 : vector<4x1xf32>
    %11 = arith.mulf %8, %8 : vector<4x1xf32>
    %12 = arith.subf %10, %11 : vector<4x1xf32>
    %cst_10 = arith.constant 0.000000e+00 : f32
    %13 = vector.broadcast %cst_10 : f32 to vector<4x1xf32>
    %14 = arith.maximumf %12, %13 : vector<4x1xf32>
    %cst_11 = arith.constant 3.125000e-02 : f32
    %15 = vector.broadcast %cst_11 : f32 to vector<4x1xf32>
    %16 = arith.mulf %6#2, %15 : vector<4x1xf32>
    %cst_12 = arith.constant 3.125000e-02 : f32
    %17 = vector.broadcast %cst_12 : f32 to vector<4x1xf32>
    %18 = arith.mulf %6#3, %17 : vector<4x1xf32>
    %19 = arith.mulf %16, %16 : vector<4x1xf32>
    %20 = arith.subf %18, %19 : vector<4x1xf32>
    %cst_13 = arith.constant 0.000000e+00 : f32
    %21 = vector.broadcast %cst_13 : f32 to vector<4x1xf32>
    %22 = arith.maximumf %20, %21 : vector<4x1xf32>
    %c0_14 = arith.constant 0 : index
    %c0_15 = arith.constant 0 : index
    %23 = vector.load %arg6[%c0_14, %c0_15] : memref<4x1xf32, #tpu.memory_space<vmem>>, vector<4x1xf32>
    %cst_16 = arith.constant 9.99999974E-6 : f32
    %24 = vector.broadcast %cst_16 : f32 to vector<4x1xf32>
    %25 = arith.addf %14, %24 : vector<4x1xf32>
    %26 = math.rsqrt %25 : vector<4x1xf32>
    %27 = arith.mulf %23, %26 : vector<4x1xf32>
    %c0_17 = arith.constant 0 : index
    %c0_18 = arith.constant 0 : index
    %28 = vector.load %arg7[%c0_17, %c0_18] : memref<4x1xf32, #tpu.memory_space<vmem>>, vector<4x1xf32>
    %29 = arith.mulf %8, %27 : vector<4x1xf32>
    %30 = arith.subf %28, %29 : vector<4x1xf32>
    %c0_19 = arith.constant 0 : index
    %c0_20 = arith.constant 0 : index
    %31 = vector.load %arg8[%c0_19, %c0_20] : memref<4x1xf32, #tpu.memory_space<vmem>>, vector<4x1xf32>
    %cst_21 = arith.constant 9.99999974E-6 : f32
    %32 = vector.broadcast %cst_21 : f32 to vector<4x1xf32>
    %33 = arith.addf %22, %32 : vector<4x1xf32>
    %34 = math.rsqrt %33 : vector<4x1xf32>
    %35 = arith.mulf %31, %34 : vector<4x1xf32>
    %c0_22 = arith.constant 0 : index
    %c0_23 = arith.constant 0 : index
    %36 = vector.load %arg9[%c0_22, %c0_23] : memref<4x1xf32, #tpu.memory_space<vmem>>, vector<4x1xf32>
    %37 = arith.mulf %16, %35 : vector<4x1xf32>
    %38 = arith.subf %36, %37 : vector<4x1xf32>
    %c0_i32_24 = arith.constant 0 : i32
    %c2_i32_25 = arith.constant 2 : i32
    %39 = arith.addi %c0_i32_24, %c2_i32_25 : i32
    %c1_i32_26 = arith.constant 1 : i32
    scf.for %arg13 = %c0_i32_24 to %39 step %c1_i32_26  : i32 {
      %40 = arith.index_cast %arg13 : i32 to index
      %c0_28 = arith.constant 0 : index
      %c0_29 = arith.constant 0 : index
      %41 = vector.load %arg11[%40, %c0_28, %c0_29] : memref<2x4x16xf32, #tpu.memory_space<vmem>>, vector<1x4x16xf32>
      %42 = vector.shape_cast %41 : vector<1x4x16xf32> to vector<4x16xf32>
      %43 = vector.broadcast %27 : vector<4x1xf32> to vector<4x16xf32>
      %44 = arith.mulf %42, %43 : vector<4x16xf32>
      %45 = vector.broadcast %30 : vector<4x1xf32> to vector<4x16xf32>
      %46 = arith.addf %44, %45 : vector<4x16xf32>
      %47 = arith.index_cast %arg13 : i32 to index
      %c0_30 = arith.constant 0 : index
      %c0_31 = arith.constant 0 : index
      %48 = vector.load %arg12[%47, %c0_30, %c0_31] : memref<2x4x16xf32, #tpu.memory_space<vmem>>, vector<1x4x16xf32>
      %49 = vector.shape_cast %48 : vector<1x4x16xf32> to vector<4x16xf32>
      %50 = vector.broadcast %35 : vector<4x1xf32> to vector<4x16xf32>
      %51 = arith.mulf %49, %50 : vector<4x16xf32>
      %52 = vector.broadcast %38 : vector<4x1xf32> to vector<4x16xf32>
      %53 = arith.addf %51, %52 : vector<4x16xf32>
      %54 = arith.negf %53 : vector<4x16xf32>
      %55 = math.exp %54 : vector<4x16xf32>
      %cst_32 = arith.constant 1.000000e+00 : f32
      %56 = vector.broadcast %cst_32 : f32 to vector<4x16xf32>
      %57 = arith.addf %56, %55 : vector<4x16xf32>
      %58 = arith.divf %56, %57 : vector<4x16xf32>
      %59 = arith.mulf %46, %58 : vector<4x16xf32>
      %60 = arith.index_cast %arg13 : i32 to index
      %c0_33 = arith.constant 0 : index
      %c0_34 = arith.constant 0 : index
      %61 = vector.load %arg10[%60, %c0_33, %c0_34] : memref<2x4x16xf32, #tpu.memory_space<vmem>>, vector<1x4x16xf32>
      %62 = vector.shape_cast %61 : vector<1x4x16xf32> to vector<4x16xf32>
      %63 = vector.shape_cast %59 : vector<4x16xf32> to vector<1x4x16xf32>
      tpu.vector_store %arg10[%60, %c0_33, %c0_34], %63 {strides = array<i32>} : memref<2x4x16xf32, #tpu.memory_space<vmem>>, vector<1x4x16xf32>,
    }
    %c2_i32_27 = arith.constant 2 : i32
    return
  }
  func.func @transform_0(%arg0: i32) -> (i32, i32, i32) {
    %c0_i32 = arith.constant 0 : i32
    %c0_i32_0 = arith.constant 0 : i32
    %c0_i32_1 = arith.constant 0 : i32
    %c0_i32_2 = arith.constant 0 : i32
    return %c0_i32, %c0_i32_0, %c0_i32_1 : i32, i32, i32
  }
  func.func @transform_1(%arg0: i32) -> (i32, i32) {
    %c0_i32 = arith.constant 0 : i32
    %c0_i32_0 = arith.constant 0 : i32
    %c0_i32_1 = arith.constant 0 : i32
    return %c0_i32, %c0_i32_0 : i32, i32
  }
  func.func @transform_2(%arg0: i32) -> (i32, i32) {
    %c0_i32 = arith.constant 0 : i32
    %c0_i32_0 = arith.constant 0 : i32
    %c0_i32_1 = arith.constant 0 : i32
    return %c0_i32, %c0_i32_0 : i32, i32
  }
  func.func @transform_3(%arg0: i32) -> (i32, i32) {
    %c0_i32 = arith.constant 0 : i32
    %c0_i32_0 = arith.constant 0 : i32
    %c0_i32_1 = arith.constant 0 : i32
    return %c0_i32, %c0_i32_0 : i32, i32
  }
  func.func @transform_4(%arg0: i32) -> (i32, i32) {
    %c0_i32 = arith.constant 0 : i32
    %c0_i32_0 = arith.constant 0 : i32
    %c0_i32_1 = arith.constant 0 : i32
    return %c0_i32, %c0_i32_0 : i32, i32
  }
  func.func @transform_5(%arg0: i32) -> (i32, i32) {
    %c0_i32 = arith.constant 0 : i32
    %c0_i32_0 = arith.constant 0 : i32
    %c0_i32_1 = arith.constant 0 : i32
    return %c0_i32, %c0_i32_0 : i32, i32
  }
  func.func @transform_6(%arg0: i32) -> (i32, i32) {
    %c0_i32 = arith.constant 0 : i32
    %c0_i32_0 = arith.constant 0 : i32
    %c0_i32_1 = arith.constant 0 : i32
    return %c0_i32, %c0_i32_0 : i32, i32
  }
  func.func @transform_7(%arg0: i32) -> (i32, i32) {
    %c0_i32 = arith.constant 0 : i32
    %c0_i32_0 = arith.constant 0 : i32
    %c0_i32_1 = arith.constant 0 : i32
    return %c0_i32, %c0_i32_0 : i32, i32
  }
  func.func @transform_8(%arg0: i32) -> (i32, i32) {
    %c0_i32 = arith.constant 0 : i32
    %c0_i32_0 = arith.constant 0 : i32
    %c0_i32_1 = arith.constant 0 : i32
    return %c0_i32, %c0_i32_0 : i32, i32
  }
  func.func @transform_9(%arg0: i32) -> (i32, i32, i32) {
    %c0_i32 = arith.constant 0 : i32
    %c0_i32_0 = arith.constant 0 : i32
    %c0_i32_1 = arith.constant 0 : i32
    %c0_i32_2 = arith.constant 0 : i32
    return %c0_i32, %c0_i32_0, %c0_i32_1 : i32, i32, i32
  }
}

</mosaic_0001>

<bundles_post_ra>
// kernel: tpu_custom_call.1
= control target key start
LH: loop header
LB: loop body
LE: loop exit
PB: predicated region body
PF: predicated region fallthrough
CT: control target
= control target key end

     0   :  { %14 = vsyncpa [#allocation5], 0  ;;  %v589_v4 = vmov 0.0   ;;  %v591_v5 = vmov 0.0   ;;  %v593_v6 = vmov 0.0   ;;  %v595_v7 = vmov 0.0   ;;  %s704_s0 = inlined_call_operand.vmem [shape: f32[2,4,128], index: 0, kind: input, shape index: {}]   ;;  %s705_s1 = inlined_call_operand.vmem [shape: f32[4,64], index: 1, kind: input, shape index: {}]   ;;  %s706_s2 = inlined_call_operand.vmem [shape: f32[4,64], index: 2, kind: input, shape index: {}]   ;;  %s707_s3 = inlined_call_operand.vmem [shape: f32[4,1], index: 3, kind: input, shape index: {}]   ;;  %s708_s4 = inlined_call_operand.vmem [shape: f32[4,1], index: 4, kind: input, shape index: {}]   ;;  %s709_s5 = inlined_call_operand.vmem [shape: f32[4,1], index: 5, kind: input, shape index: {}]   ;;  %s710_s6 = inlined_call_operand.vmem [shape: f32[4,1], index: 6, kind: input, shape index: {}]   ;;  %s711_s7 = inlined_call_operand.vmem [shape: f32[4,1], index: 7, kind: input, shape index: {}]   ;;  %s712_s8 = inlined_call_operand.vmem [shape: f32[4,1], index: 8, kind: input, shape index: {}]   ;;  %s713_s9 = inlined_call_operand.hbm [shape: f32[2,4,16], index: 9, kind: output, shape index: {}]  }
   0x1   :  { %v572_v0 = vld [vmem:[%s705_s1] sm:$0xf]  ;;  %s597_s1 = smov 0  }
   0x2   :  { %v577_v1 = vld [vmem:[%s706_s2] sm:$0xf] }
   0x3   :  { %v582_v2 = vld [vmem:[%s707_s3] sm:$0xf] }
   0x4   :  { %v587_v3 = vld [vmem:[%s708_s4] sm:$0xf] }
   0x5 LB: > { %s615_s2 = sshll.u32 %s494_s1, 2  ;;  %s500_s18 = smov 117   ;;  %v514_v13 = vmov 0   ;;  %vm99_vm0 = vcmask 1043456   ;;  %vm113_vm1 = vcmask 523264   ;;  %vm166_vm2 = vcmask 125952   ;;  %s494_s1 = sphi %s597_s1, %s42_s1   ;;  %v490_v7 = vphi %v595_v7, %v717_v7   ;;  %v486_v6 = vphi %v593_v6, %v716_v6   ;;  %v482_v5 = vphi %v591_v5, %v715_v5   ;;  %v478_v4 = vphi %v589_v4, %v714_v4  }
   0x6   : > { %s48_s17 = scalar_lea.vmem %s704_s0, %s615_s2  ;;  %s501_s19 = smov 115   ;;  %415 = vset.pattern.permute.xlu0 %v514_v13  ;;  %414 = vset.pattern.permute.xlu2 %v514_v13 }
   0x7   : > { %v621_v8 = vld [vmem:[%s48_s17] sm:$0xf]  ;;  %s502_s20 = smov 119   ;;  %s503_s21 = smov 116  }
   0x8   : > { %70 = vrot.lane.b32.xlu1 %v621_v8, %s500_s18  ;;  %74 = vrot.lane.b32.xlu0 %v621_v8, %s501_s19  ;;  %s504_s22 = smov 114   ;;  %s505_s23 = smov 118  }
   0x9   : > { %66 = vrot.lane.b32.xlu2 %v621_v8, %s502_s20  ;;  %s506_s24 = smov 120   ;;  %s507_s25 = smov 121  }
   0xa   : > { %s508_s26 = smov 123   ;;  %s509_s27 = smov 125  }
   0xb   : > { %s510_s28 = smov 122   ;;  %s511_s29 = smov 124  }
   0xc   : > { %s512_s30 = smov 126   ;;  %s513_s10 = smov 127  }
   0xd   : > { %s165_s11 = scalar_lea.vmem [#allocation2], %s615_s2  ;;  %s168_s12 = scalar_lea.vmem [#allocation3], %s615_s2 }
   0xe   : > { %s42_s1 = sadd.s32 1, %s494_s1  }
   0xf   : > { %p39_p0 = scmp.ge.s32.totalorder %s42_s1, 2  }
  0x10   : > { %72 = vrot.lane.b32.xlu1 %v621_v8, %s503_s21  ;;  %76 = vrot.lane.b32.xlu0 %v621_v8, %s504_s22 }
  0x11   : > { %68 = vrot.lane.b32.xlu2 %v621_v8, %s505_s23 }
  0x18   : > { %64 = vrot.lane.b32.xlu1 %v621_v8, %s506_s24  ;;  %62 = vrot.lane.b32.xlu0 %v621_v8, %s507_s25 }
  0x19   : > { %58 = vrot.lane.b32.xlu2 %v621_v8, %s508_s26 }
  0x20   : > { %54 = vrot.lane.b32.xlu1 %v621_v8, %s509_s27  ;;  %60 = vrot.lane.b32.xlu0 %v621_v8, %s510_s28 }
  0x21   : > { %56 = vrot.lane.b32.xlu2 %v621_v8, %s511_s29 }
  0x28   : > { %52 = vrot.lane.b32.xlu1 %v621_v8, %s512_s30  ;;  %50 = vrot.lane.b32.xlu0 %v621_v8, %s513_s10 }
  0x29   : > { %110 = vperm.xlu2 %414, %v582_v2  }
  0x30   : > { %139 = vperm.xlu0 %415, %v587_v3  }
  0x63   : > { %v67_v9 = vpop.permute.xlu2 %66 }
  0x64   : > { %v91_v21 = vrot.slane %v67_v9, 4 }
  0x6b   : > { %v69_v12 = vpop.permute.xlu2 %68 }
  0x73   : > { %v59_v20 = vpop.permute.xlu2 %58 }
  0x74   : > { %v85_v25 = vrot.slane %v59_v20, 4 }
  0x7a   : > { %v71_v10 = vpop.permute.xlu1 %70  ;;  %v75_v11 = vpop.permute.xlu0 %74 }
  0x7b   : > { %v97_v14 = vrot.slane %v75_v11, 4  ;;  %v94_v15 = vrot.slane %v71_v10, 4  ;;  %v57_v27 = vpop.permute.xlu2 %56 }
  0x7c   : > { %v102_v31 = vsel %vm99_vm0, %v57_v27, %v85_v25 }
  0x7d   : > { %v105_v19 = vsel %vm99_vm0, %v69_v12, %v94_v15 }
  0x82   : > { %v73_v16 = vpop.permute.xlu1 %72  ;;  %v77_v17 = vpop.permute.xlu0 %76 }
  0x83   : > { %341 = vmatpush.msk.msra.mxu0 %vm99_vm0, %v77_v17  ;;  %343 = vmatpush.msk.msra.mxu1 %vm99_vm0, %v77_v17  ;;  %v106_v18 = vsel %vm99_vm0, %v73_v16, %v97_v14  ;;  %v111_v38 = vpop.permute.xlu2 %110 }
  0x85   : > { %126 = vmatpush.msra.mxu0 %v106_v18  ;;  %154 = vmatpush.msra.mxu1 %v106_v18 }
  0x87   : > { %127 = vmatpush.msra.mxu0 %v105_v19  ;;  %155 = vmatpush.msra.mxu1 %v105_v19 }
  0x8a   : > { %v65_v22 = vpop.permute.xlu1 %64  ;;  %v63_v23 = vpop.permute.xlu0 %62 }
  0x8b   : > { %v104_v24 = vsel %vm99_vm0, %v65_v22, %v91_v21  ;;  %v88_v26 = vrot.slane %v63_v23, 4  ;;  %v211_v23 = vld [vmem:[%s710_s6] sm:$0xf] (%p39_p0) }
  0x8c   : > { %128 = vmatpush.msra.mxu0 %v104_v24  ;;  %156 = vmatpush.msra.mxu1 %v104_v24 }
  0x92   : > { %v55_v28 = vpop.permute.xlu1 %54  ;;  %v61_v29 = vpop.permute.xlu0 %60 }
  0x93   : > { %v103_v30 = vsel %vm99_vm0, %v61_v29, %v88_v26  ;;  %v82_v32 = vrot.slane %v55_v28, 4  ;;  %v227_v26 = vld [vmem:[%s712_s8] sm:$0xf] (%p39_p0) }
  0x94   : > { %129 = vmatpush.msra.mxu0 %v103_v30  ;;  %157 = vmatpush.msra.mxu1 %v103_v30 }
  0x96   : > { %130 = vmatpush.msra.mxu0 %v102_v31  ;;  %158 = vmatpush.msra.mxu1 %v102_v31 }
  0x9a   : > { %v53_v33 = vpop.permute.xlu1 %52  ;;  %v51_v34 = vpop.permute.xlu0 %50 }
  0x9b   : > { %v79_v35 = vrot.slane %v51_v34, 4  ;;  %v101_v36 = vsel %vm99_vm0, %v53_v33, %v82_v32 }
  0x9c   : > { %131 = vmatpush.msra.mxu0 %v101_v36  ;;  %159 = vmatpush.msra.mxu1 %v101_v36 }
  0x9d   : > { %v100_v37 = vsel %vm99_vm0, %v621_v8, %v79_v35 }
  0x9e   : > { %132 = vmatpush.msra.mxu0 %v100_v37  ;;  %160 = vmatpush.msra.mxu1 %v100_v37 }
  0x9f   : > { %342 = vmatmul.msk.f32.vlgmr.msra.gmra.mxu0 %vm113_vm1, %v572_v0  ;;  %344 = vmatmul.msk.f32.vlgmr.msra.gmra.mxu1 %vm113_vm1, %v577_v1 }
  0xa2   : > { %v140_v39 = vpop.permute.xlu0 %139 }
 0x11c   : > { %v134_v40 = vpop.f32.mrf.mxu0  ;;  %v162_v41 = vpop.f32.mrf.mxu1 }
 0x11d   : > { %v135_v42 = vadd.f32 %v134_v40, %v111_v38  ;;  %v163_v43 = vadd.f32 %v162_v41, %v140_v39 }
 0x11f   : > { %167 = vst.msk [vmem:[%s165_s11] sm:$0xf] %vm166_vm2, %v135_v42  ;;  %v170_v44 = vsel %vm166_vm2, %v135_v42, 0.0  ;;  %v174_v45 = vmul.f32 %v135_v42, %v135_v42  ;;  %v179_v46 = vsel %vm166_vm2, %v163_v43, 0.0  ;;  %v183_v48 = vmul.f32 %v163_v43, %v163_v43 }
 0x120   : > { %171 = vadd.xlane.f32.xlu1 %v170_v44  ;;  %169 = vst.msk [vmem:[%s168_s12] sm:$0xf] %vm166_vm2, %v163_v43  ;;  %180 = vadd.xlane.f32.xlu0 %v179_v46 }
 0x121   : > { %v175_v47 = vsel %vm166_vm2, %v174_v45, 0.0  ;;  %v184_v49 = vsel %vm166_vm2, %v183_v48, 0.0 }
 0x122   : > { %176 = vadd.xlane.f32.xlu2 %v175_v47 }
 0x12a   : > { %185 = vadd.xlane.f32.xlu2 %v184_v49 }
 0x193   : > { %v172_v50 = vpop.xlane.xlu1 %171  ;;  %v181_v51 = vpop.xlane.xlu0 %180 }
 0x194   : > { %v173_v52 = vadd.f32 %v490_v7, %v172_v50   ;;  %v182_v53 = vadd.f32 %v482_v5, %v181_v51  }
 0x195   : > { %v177_v54 = vpop.xlane.xlu2 %176 }
 0x196   : > { %v178_v55 = vadd.f32 %v486_v6, %v177_v54   ;;  %v715_v5 = vmov %v182_v53  ;;  %v717_v7 = vmov %v173_v52  ;;  %v188_v58 = vmul.f32 (%p39_p0), 0.03125, %v173_v52 }
 0x197   :  { %v193_v60 = vmul.f32 (%p39_p0), 0.03125, %v182_v53 }
 0x198   : > { %v716_v6 = vmov %v178_v55  ;;  %v189_v59 = vmul.f32 (%p39_p0), 0.03125, %v178_v55  ;;  %v190_v62 = vmul.f32 (%p39_p0), %v188_v58, %v188_v58 }
 0x199   :  { %v195_v63 = vmul.f32 (%p39_p0), %v193_v60, %v193_v60  ;;  %v214_v6 = vld [vmem:[%s711_s7] sm:$0xf] (%p39_p0) }
 0x19a   :  { %v191_v7 = vsub.f32 (%p39_p0), %v189_v59, %v190_v62 }
 0x19c   :  { %41 = sbr.rel (!%p39_p0) target bundleno = 5 (0x5), region = 76  ;;  %v192_v9 = vmax.f32 (%p39_p0), %v191_v7, 0.0 }
 0x19d   : > { %v186_v56 = vpop.xlane.xlu2 %185 }
 0x19e   : > { %v187_v57 = vadd.f32 %v478_v4, %v186_v56   ;;  %v199_v11 = vadd.f32 (%p39_p0), 1e-05, %v192_v9 }
 0x1a0   : > { %v714_v4 = vmov %v187_v57  ;;  %v194_v61 = vmul.f32 (%p39_p0), 0.03125, %v187_v57  ;;  %416 = vrsqrt.f32 (%p39_p0), %v199_v11  ;;  %vm206_vm3 = vweird.f32 (%p39_p0), %v199_v11 }
 0x1a1   :  { %v198_v4 = vld [vmem:[%s709_s5] sm:$0xf]  ;;  %s686_s5 = smov 0  }
 0x1a2   :  { %v196_v8 = vsub.f32 %v194_v61, %v195_v63 }
 0x1a4   :  { %v197_v10 = vmax.f32 %v196_v8, 0.0 }
 0x1a6   :  { %v215_v12 = vadd.f32 1e-05, %v197_v10  ;;  %v417_v13 = vpop.eup %416 }
 0x1a7   :  { %v201_v15 = vmul.f32 %v417_v13, %v199_v11  ;;  %vm207_vm4 = vweird.f32 %v417_v13 }
 0x1a8   :  { %418 = vrsqrt.f32 %v215_v12  ;;  %vm222_vm5 = vweird.f32 %v215_v12  ;;  %vm208_vm7 = vmor %vm206_vm3, %vm207_vm4 }
 0x1a9   :  { %v202_v17 = vmul.f32 %v417_v13, %v201_v15 }
 0x1ab   :  { %v203_v0 = vmul.f32 0.5, %v202_v17 }
 0x1ad   :  { %v204_v2 = vsub.f32 1.5, %v203_v0 }
 0x1ae   :  { %v419_v14 = vpop.eup %418 }
 0x1af   :  { %v217_v16 = vmul.f32 %v419_v14, %v215_v12  ;;  %vm223_vm6 = vweird.f32 %v419_v14  ;;  %v205_v5 = vmul.f32 %v417_v13, %v204_v2 }
 0x1b0   :  { %vm224_vm8 = vmor %vm222_vm5, %vm223_vm6 }
 0x1b1   :  { %v218_v18 = vmul.f32 %v419_v14, %v217_v16  ;;  %v209_v20 = vsel %vm208_vm7, %v417_v13, %v205_v5 }
 0x1b2   :  { %v210_v21 = vmul.f32 %v209_v20, %v198_v4 }
 0x1b3   :  { %v219_v1 = vmul.f32 0.5, %v218_v18 }
 0x1b4   :  { %v212_v25 = vmul.f32 %v210_v21, %v188_v58 }
 0x1b5   :  { %v220_v3 = vsub.f32 1.5, %v219_v1 }
 0x1b6   :  { %v213_v28 = vsub.f32 %v211_v23, %v212_v25 }
 0x1b7   :  { %v221_v19 = vmul.f32 %v419_v14, %v220_v3 }
 0x1b9   :  { %v225_v22 = vsel %vm224_vm8, %v419_v14, %v221_v19 }
 0x1ba   :  { %v226_v24 = vmul.f32 %v225_v22, %v214_v6 }
 0x1bc   :  { %v228_v27 = vmul.f32 %v226_v24, %v193_v60 }
 0x1be   :  { %v229_v29 = vsub.f32 %v227_v26, %v228_v27 }
 0x1bf LB: > { %v515_v30 = vmov 0   ;;  %s692_s6 = sshll.u32 %s498_s5, 2  ;;  %s235_s5 = sadd.s32 1, %s498_s5   ;;  %s498_s5 = sphi %s686_s5, %s235_s5  }
 0x1c0   : > { %420 = vset.pattern.permute.xlu0 %v515_v30  ;;  %421 = vset.pattern.permute.xlu1 %v515_v30  ;;  %s251_s7 = scalar_lea.vmem [#allocation3], %s692_s6  ;;  %s237_s8 = scalar_lea.vmem [#allocation2], %s692_s6 }
 0x1c1   : > { %255 = vperm.xlu0 %420, %v226_v24   ;;  %241 = vperm.xlu1 %421, %v210_v21   ;;  %v252_v32 = vld [vmem:[%s251_s7] sm:$0xf]  ;;  %s285_s4 = scalar_lea.vmem [#allocation4], %s692_s6  ;;  %p232_p1 = scmp.ge.s32.totalorder %s235_s5, 2  }
 0x1c2   : > { %v238_v42 = vld [vmem:[%s237_s8] sm:$0xf]  ;;  %s294_s19 = sshll.u32 (%p232_p1), %s713_s9, 4  ;;  %s516_s20 = smov (%p232_p1), [#allocation4]   ;;  %s295_s19 = int_to_ptr.hbm [resolvable:$true] %s294_s19 }
 0x1c3   :  { %s292_s21 = sshll.u32 (%p232_p1), %s516_s20, 4  ;;  %s517_s22 = smov (%p232_p1), 64   ;;  %s293_s21 = int_to_ptr.vmem [resolvable:$true] %s292_s21 }
 0x1c4   :  { %s518_s23 = smov (%p232_p1), 4  }
 0x1c9   : > { %261 = vperm.xlu0 %420, %v229_v29   ;;  %247 = vperm.xlu1 %421, %v213_v28  }
 0x233   : > { %v256_v31 = vpop.permute.xlu0 %255  ;;  %v242_v39 = vpop.permute.xlu1 %241 }
 0x234   : > { %v258_v33 = vmul.f32 %v256_v31, %v252_v32  ;;  %v244_v45 = vmul.f32 %v242_v39, %v238_v42 }
 0x23b   : > { %v262_v34 = vpop.permute.xlu0 %261  ;;  %v248_v48 = vpop.permute.xlu1 %247 }
 0x23c   : > { %v264_v35 = vadd.f32 %v262_v34, %v258_v33  ;;  %v250_v51 = vadd.f32 %v248_v48, %v244_v45 }
 0x23e   : > { %v346_v36 = vmul.f32 -1.442695, %v264_v35 }
 0x240   : > { %422 = vpow2.f32 %v346_v36 }
 0x246   : > { %v423_v37 = vpop.eup %422 }
 0x247   : > { %v268_v38 = vadd.f32 1.0, %v423_v37 }
 0x249   : > { %424 = vrcp.f32 %v268_v38  ;;  %v280_v44 = vand.u32 2147483648, %v268_v38  ;;  %v278_v47 = vand.u32 2147483647, %v268_v38  ;;  %vm274_vm10 = vweird.f32 %v268_v38 }
 0x24b   : > { %v281_v50 = vor.u32 1.1754944e-38, %v280_v44  ;;  %vm279_vm12 = vcmp.eq.f32.partialorder %v278_v47, 8.507059e+37 }
 0x24f   : > { %v425_v40 = vpop.eup %424 }
 0x250   : > { %v270_v41 = vmul.f32 %v425_v40, %v268_v38  ;;  %vm275_vm9 = vweird.f32 %v425_v40 }
 0x251   : > { %vm276_vm11 = vmor %vm274_vm10, %vm275_vm9 }
 0x252   : > { %v271_v43 = vsub.f32 1.0, %v270_v41 }
 0x254   : > { %v272_v46 = vmul.f32 %v425_v40, %v271_v43 }
 0x256   : > { %v273_v49 = vadd.f32 %v425_v40, %v272_v46 }
 0x258   : > { %v277_v52 = vsel %vm276_vm11, %v425_v40, %v273_v49  ;;  %234 = sbr.rel (!%p232_p1) target bundleno = 447 (0x1bf), region = 87 }
 0x259   : > { %v282_v53 = vsel %vm279_vm12, %v281_v50, %v277_v52 }
 0x25a   : > { %v284_v54 = vmul.f32 %v282_v53, %v250_v51 }
 0x25c   : > { %287 = vst.msk [vmem:[%s285_s4] sm:$0xf] %vm166_vm2, %v284_v54 }
 0x25d   :  { %300 = dma.vmem_to_hbm [thread:$0]  %s293_s21, 128, %s295_s19, [#allocation5], %s517_s22, %s517_s22, %s518_s23  }
 0x25e   :  { %474 = dma.done.wait [#allocation5], 128  }
 0x25f   :  { %475 = vsyncadd [#allocation5], 4294967168 }
 0x260   :  { %305 = vsyncpa [#allocation5], 1 }

</bundles_post_ra>
